<compile_context>
chip_gen: v5e
topology: v5e:2x2
jax: 0.10.0
libtpu: 0.0.40
codegen_flags: <defaults>
</compile_context>

<pallas_src>
import functools
import math

import jax
import jax.numpy as jnp
from jax import lax
from jax.experimental import pallas as pl
from jax.experimental.pallas import tpu as pltpu
import numpy as np

LN_EPS = 1e-5  # PyTorch nn.LayerNorm default


def _layernorm(x, gamma, beta):
    mean = jnp.mean(x, axis=-1, keepdims=True)
    var = jnp.mean((x - mean) ** 2, axis=-1, keepdims=True)
    return (x - mean) * lax.rsqrt(var + LN_EPS) * gamma + beta


def _gelu_exact(x):
    # nn.GELU() default (approximate='none'): 0.5 * x * (1 + erf(x / sqrt(2)))
    return 0.5 * x * (1.0 + lax.erf(x * (1.0 / math.sqrt(2.0))))


def encode_block_kernel(
    x_ref,        # (rows, D)
    wqkv_ref,     # (D, 3D)  matmul_dtype; 1/sqrt(hd) folded into the q columns
    wp_ref,       # (D, D)   matmul_dtype
    w1_ref,       # (D, D)   matmul_dtype
    w2_ref,       # (D, D)   matmul_dtype
    bqkv_ref,     # (1, 3D)  f32: scaled bq | bk | bv
    vec_ref,      # (8, D)   f32 packed: bp, b1, b2, ln1_g, ln1_b, ln2_g, ln2_b, pad
    o_ref,        # (rows, D)
    *, n_head, L, matmul_dtype,
):
    rows, D = x_ref.shape
    bt = rows // L
    hd = D // n_head

    vec = vec_ref[...]
    bp, b1, b2 = vec[0:1], vec[1:2], vec[2:3]
    ln1_g, ln1_b = vec[3:4], vec[4:5]
    ln2_g, ln2_b = vec[5:6], vec[6:7]

    # --- fused QKV projection: one (rows, D) @ (D, 3D) MXU call ---
    qkv = jnp.dot(x_ref[...].astype(matmul_dtype), wqkv_ref[...],
                  preferred_element_type=jnp.float32) + bqkv_ref[...]
    qkv = qkv.astype(matmul_dtype)   # q/k/v only feed matmuls from here on

    # --- self attention (unmasked) ---
    # Head outputs are fed straight into the output projection by accumulating
    # (rows, hd) @ (hd, D) partial matmuls against row-slices of wp:
    # concat_h(y_h) @ wp == sum_h  y_h @ wp[h*hd:(h+1)*hd, :]
    y = jnp.zeros((rows, D), jnp.float32)
    for h in range(n_head):                     # static, small H
        qo, ko, vo = h * hd, D + h * hd, 2 * D + h * hd
        if bt == 1:
            qh = qkv[:, qo:qo + hd]
            kh = qkv[:, ko:ko + hd]
            vh = qkv[:, vo:vo + hd]
            att = jnp.einsum('qd,kd->qk', qh, kh,
                             preferred_element_type=jnp.float32)
            att = jnp.exp(att - jnp.max(att, axis=-1, keepdims=True))
            att = att * pl.reciprocal(jnp.sum(att, axis=-1, keepdims=True),
                                      approx=False)
            yh = jnp.einsum('qk,kd->qd', att.astype(matmul_dtype), vh,
                            preferred_element_type=jnp.float32)
        else:
            qh = qkv[:, qo:qo + hd].reshape(bt, L, hd)
            kh = qkv[:, ko:ko + hd].reshape(bt, L, hd)
            vh = qkv[:, vo:vo + hd].reshape(bt, L, hd)
            att = jnp.einsum('bqd,bkd->bqk', qh, kh,
                             preferred_element_type=jnp.float32)
            att = jnp.exp(att - jnp.max(att, axis=-1, keepdims=True))
            att = att * pl.reciprocal(jnp.sum(att, axis=-1, keepdims=True),
                                      approx=False)
            yh = jnp.einsum('bqk,bkd->bqd', att.astype(matmul_dtype), vh,
                            preferred_element_type=jnp.float32
                            ).reshape(rows, hd)
        y = y + jnp.dot(yh.astype(matmul_dtype),
                        wp_ref[h * hd:(h + 1) * hd, :],
                        preferred_element_type=jnp.float32)
    y = y + bp

    # --- residual + LayerNorm1 ---
    # x is re-read here (not kept live across attention) to cut vreg pressure.
    h1 = _layernorm(x_ref[...].astype(jnp.float32) + y, ln1_g, ln1_b)

    # --- MLP: Linear -> GELU -> Linear ---
    m = jnp.dot(h1.astype(matmul_dtype), w1_ref[...],
                preferred_element_type=jnp.float32) + b1
    m = _gelu_exact(m)
    m = jnp.dot(m.astype(matmul_dtype), w2_ref[...],
                preferred_element_type=jnp.float32) + b2

    # --- residual + LayerNorm2 ---
    o_ref[...] = _layernorm(h1 + m, ln2_g, ln2_b).astype(o_ref.dtype)


def _choose_bt(B, L, target_rows=256):
    """Pick bt (batch elems per grid step) such that:
       * bt divides B                       -> no wrapper-side padding copy,
       * bt*L is a multiple of 8 (or bt==B) -> (8,128)-legal block,
       * bt*L <= target_rows (~256 MXU rows) when possible,
       * prefer an even number (>= 2) of grid steps (v7x two TensorCores)."""
    cands = [bt for bt in range(1, B + 1)
             if B % bt == 0 and ((bt * L) % 8 == 0 or bt == B)]
    capped = [bt for bt in cands if bt * L <= target_rows] or [min(cands)]
    even_multi = [bt for bt in capped
                  if (B // bt) >= 2 and (B // bt) % 2 == 0]
    return max(even_multi) if even_multi else max(capped)


def encode_block(x, params, n_head, *, matmul_dtype=jnp.float32):
    (wq, wk, wv, wp, bq, bk, bv, bp,
     ln1_g, ln1_b, w1, b1, w2, b2, ln2_g, ln2_b) = params
    B, L, D = x.shape
    assert D % n_head == 0
    hd = D // n_head
    scale = 1.0 / math.sqrt(hd)

    # Fold the 1/sqrt(hd) scale into the query projection and fuse Q|K|V into
    # one (D, 3D) weight / (1, 3D) bias.
    wqkv = jnp.concatenate([wq * scale, wk, wv], axis=1).astype(matmul_dtype)
    bqkv = jnp.concatenate([bq * scale, bk, bv], axis=1).astype(jnp.float32)
    wp_ = wp.astype(matmul_dtype)
    w1_ = w1.astype(matmul_dtype)
    w2_ = w2.astype(matmul_dtype)

    # Pack the remaining (1, D) bias / LayerNorm vectors into one (8, D) block
    # (one DMA + one double-buffer instead of seven).
    vec = jnp.concatenate(
        [bp, b1, b2, ln1_g, ln1_b, ln2_g, ln2_b,
         jnp.zeros((1, D), jnp.float32)], axis=0)

    # Fold batch into the matmul M dimension; bt divides B so there is no
    # padding pass over x in HBM.
    bt = _choose_bt(B, L, target_rows=256)
    num_tiles = B // bt
    rows = bt * L

    x2 = x.reshape(B * L, D)
    full2d = lambda arr: pl.BlockSpec(arr.shape, lambda i: (0, 0))

    grid_spec = pltpu.PrefetchScalarGridSpec(
        num_scalar_prefetch=0,
        grid=(num_tiles,),
        in_specs=[pl.BlockSpec((rows, D), lambda i: (i, 0)),
                  full2d(wqkv), full2d(wp_), full2d(w1_), full2d(w2_),
                  full2d(bqkv), full2d(vec)],
        out_specs=pl.BlockSpec((rows, D), lambda i: (i, 0)),
    )

    kernel = functools.partial(encode_block_kernel, n_head=n_head, L=L,
                               matmul_dtype=matmul_dtype)
    out = pl.pallas_call(
        kernel,
        out_shape=jax.ShapeDtypeStruct((B * L, D), x.dtype),
        grid_spec=grid_spec,
        compiler_params=pltpu.CompilerParams(
            dimension_semantics=("parallel",)),
    )(x2, wqkv, wp_, w1_, w2_, bqkv, vec)

    return out.reshape(B, L, D)


def make_params(key, n_embd):
    """Deterministic synthetic parameters (shapes match EncodeBlock.__init__).

    Linear weights are stored as (in, out) == PyTorch weight.T.
    """
    D = n_embd
    keys = jax.random.split(key, 8)

    def lin(k, gain):
        w = gain * jax.random.normal(k, (D, D), jnp.float32)
        b = jnp.zeros((1, D), jnp.float32)
        return w, b

    wq, bq = lin(keys[0], 0.01)
    wk, bk = lin(keys[1], 0.01)
    wv, bv = lin(keys[2], 0.01)
    wp, bp = lin(keys[3], 0.01)
    relu_gain = math.sqrt(2.0)
    w1, b1 = lin(keys[4], relu_gain * 0.1)
    w2, b2 = lin(keys[5], 0.01)
    ln1_g = jnp.ones((1, D), jnp.float32)
    ln1_b = jnp.zeros((1, D), jnp.float32)
    ln2_g = jnp.ones((1, D), jnp.float32)
    ln2_b = jnp.zeros((1, D), jnp.float32)

    return (wq, wk, wv, wp, bq, bk, bv, bp,
            ln1_g, ln1_b, w1, b1, w2, b2, ln2_g, ln2_b)


def encode_block_ref(x, params, n_head):
    """Pure-JAX reference mirroring the PyTorch forward exactly."""
    (wq, wk, wv, wp, bq, bk, bv, bp,
     ln1_g, ln1_b, w1, b1, w2, b2, ln2_g, ln2_b) = params
    B, L, D = x.shape
    hd = D // n_head

    def heads(t):  # (B, L, D) -> (B, H, L, hd)
        return t.reshape(B, L, n_head, hd).transpose(0, 2, 1, 3)

    q = heads(x @ wq + bq[0])
    k = heads(x @ wk + bk[0])
    v = heads(x @ wv + bv[0])
    att = (q @ k.transpose(0, 1, 3, 2)) * (1.0 / math.sqrt(hd))
    att = jax.nn.softmax(att, axis=-1)
    y = (att @ v).transpose(0, 2, 1, 3).reshape(B, L, D)
    y = y @ wp + bp[0]

    h1 = _layernorm(x + y, ln1_g[0], ln1_b[0])
    m = _gelu_exact(h1 @ w1 + b1[0]) @ w2 + b2[0]
    return _layernorm(h1 + m, ln2_g[0], ln2_b[0])


if __name__ == "__main__":
    B, n_agent, n_embd, n_head = 2, 7, 32, 4
    L = n_agent + 1  # sequence length used by MAT (n_agent + 1)

    key = jax.random.PRNGKey(0)
    kx, kp = jax.random.split(key)
    x = jax.random.normal(kx, (B, L, n_embd), jnp.float32)
    params = make_params(kp, n_embd)

    out = encode_block(x, params, n_head)
    out = jax.block_until_ready(out)

    ref = encode_block_ref(x, params, n_head)
    np.testing.assert_allclose(np.asarray(out), np.asarray(ref),
                               rtol=1e-4, atol=1e-4)
    print("KERNEL_OK")
</pallas_src>

<mosaic_0001>
module attributes {stable_mosaic.version = 11 : i64} {
  func.func @encode_block_kernel(%arg0: i32, %arg1: memref<8x32xf32, #tpu.memory_space<vmem>>, %arg2: memref<32x96xf32, #tpu.memory_space<vmem>>, %arg3: memref<32x32xf32, #tpu.memory_space<vmem>>, %arg4: memref<32x32xf32, #tpu.memory_space<vmem>>, %arg5: memref<32x32xf32, #tpu.memory_space<vmem>>, %arg6: memref<1x96xf32, #tpu.memory_space<vmem>>, %arg7: memref<8x32xf32, #tpu.memory_space<vmem>>, %arg8: memref<8x32xf32, #tpu.memory_space<vmem>>) attributes {dimension_semantics = [#tpu.dimension_semantics<parallel>], iteration_bounds = array<i64: 2>, scalar_prefetch = 0 : i64, scratch_operands = 0 : i64, tpu.core_type = #tpu.core_type<tc>, window_params = [{transform_indices = @transform_0, window_bounds = array<i64: 8, 32>}, {pipeline_mode = #tpu.pipeline_mode<synchronous>, transform_indices = @transform_1, window_bounds = array<i64: 32, 96>}, {pipeline_mode = #tpu.pipeline_mode<synchronous>, transform_indices = @transform_2, window_bounds = array<i64: 32, 32>}, {pipeline_mode = #tpu.pipeline_mode<synchronous>, transform_indices = @transform_3, window_bounds = array<i64: 32, 32>}, {pipeline_mode = #tpu.pipeline_mode<synchronous>, transform_indices = @transform_4, window_bounds = array<i64: 32, 32>}, {pipeline_mode = #tpu.pipeline_mode<synchronous>, transform_indices = @transform_5, window_bounds = array<i64: 1, 96>}, {pipeline_mode = #tpu.pipeline_mode<synchronous>, transform_indices = @transform_6, window_bounds = array<i64: 8, 32>}, {transform_indices = @transform_7, window_bounds = array<i64: 8, 32>}]} {
    %c0 = arith.constant 0 : index
    %c0_0 = arith.constant 0 : index
    %0 = vector.load %arg7[%c0, %c0_0] : memref<8x32xf32, #tpu.memory_space<vmem>>, vector<8x32xf32>
    %1 = vector.extract_strided_slice %0 {offsets = [0, 0], sizes = [1, 32], strides = [1, 1]} : vector<8x32xf32> to vector<1x32xf32>
    %2 = vector.extract_strided_slice %0 {offsets = [1, 0], sizes = [1, 32], strides = [1, 1]} : vector<8x32xf32> to vector<1x32xf32>
    %3 = vector.extract_strided_slice %0 {offsets = [2, 0], sizes = [1, 32], strides = [1, 1]} : vector<8x32xf32> to vector<1x32xf32>
    %4 = vector.extract_strided_slice %0 {offsets = [3, 0], sizes = [1, 32], strides = [1, 1]} : vector<8x32xf32> to vector<1x32xf32>
    %5 = vector.extract_strided_slice %0 {offsets = [4, 0], sizes = [1, 32], strides = [1, 1]} : vector<8x32xf32> to vector<1x32xf32>
    %6 = vector.extract_strided_slice %0 {offsets = [5, 0], sizes = [1, 32], strides = [1, 1]} : vector<8x32xf32> to vector<1x32xf32>
    %7 = vector.extract_strided_slice %0 {offsets = [6, 0], sizes = [1, 32], strides = [1, 1]} : vector<8x32xf32> to vector<1x32xf32>
    %c0_1 = arith.constant 0 : index
    %c0_2 = arith.constant 0 : index
    %8 = vector.load %arg1[%c0_1, %c0_2] : memref<8x32xf32, #tpu.memory_space<vmem>>, vector<8x32xf32>
    %c0_3 = arith.constant 0 : index
    %c0_4 = arith.constant 0 : index
    %9 = vector.load %arg2[%c0_3, %c0_4] : memref<32x96xf32, #tpu.memory_space<vmem>>, vector<32x96xf32>
    %cst = arith.constant dense<0.000000e+00> : vector<8x96xf32>
    %10 = tpu.matmul %8, %9, %cst {dimension_numbers = #tpu.dot_dimension_numbers<[1], [0], [0], [1], [0, 0, 1, 1], [], []>} : vector<8x32xf32>, vector<32x96xf32>, vector<8x96xf32> -> vector<8x96xf32>
    %c0_5 = arith.constant 0 : index
    %c0_6 = arith.constant 0 : index
    %11 = vector.load %arg6[%c0_5, %c0_6] : memref<1x96xf32, #tpu.memory_space<vmem>>, vector<1x96xf32>
    %12 = vector.broadcast %11 : vector<1x96xf32> to vector<8x96xf32>
    %13 = arith.addf %10, %12 : vector<8x96xf32>
    %cst_7 = arith.constant 0.000000e+00 : f32
    %14 = vector.broadcast %cst_7 : f32 to vector<8x32xf32>
    %15 = vector.extract_strided_slice %13 {offsets = [0, 0], sizes = [8, 8], strides = [1, 1]} : vector<8x96xf32> to vector<8x8xf32>
    %16 = vector.extract_strided_slice %13 {offsets = [0, 32], sizes = [8, 8], strides = [1, 1]} : vector<8x96xf32> to vector<8x8xf32>
    %17 = vector.extract_strided_slice %13 {offsets = [0, 64], sizes = [8, 8], strides = [1, 1]} : vector<8x96xf32> to vector<8x8xf32>
    "tpu.trace_start"() <{level = 10 : i32, message = "qd,kd->qk"}> : () -> ()
    %cst_8 = arith.constant dense<0.000000e+00> : vector<8x8xf32>
    %18 = tpu.matmul %15, %16, %cst_8 {dimension_numbers = #tpu.dot_dimension_numbers<[1], [1], [0], [0], [0, 0, 1, 0], [], []>} : vector<8x8xf32>, vector<8x8xf32>, vector<8x8xf32> -> vector<8x8xf32>
    "tpu.trace_stop"() : () -> ()
    %cst_9 = arith.constant dense<0xFF800000> : vector<8xf32>
    %19 = vector.multi_reduction <maximumf>, %18, %cst_9 [1] : vector<8x8xf32> to vector<8xf32>
    %20 = vector.shape_cast %19 : vector<8xf32> to vector<8x1xf32>
    %21 = vector.broadcast %20 : vector<8x1xf32> to vector<8x8xf32>
    %22 = arith.subf %18, %21 : vector<8x8xf32>
    %23 = math.exp %22 : vector<8x8xf32>
    %cst_10 = arith.constant dense<0.000000e+00> : vector<8xf32>
    %24 = vector.multi_reduction <add>, %23, %cst_10 [1] : vector<8x8xf32> to vector<8xf32>
    %25 = vector.shape_cast %24 : vector<8xf32> to vector<8x1xf32>
    %26 = tpu.reciprocal %25 : vector<8x1xf32> -> vector<8x1xf32>
    %27 = vector.broadcast %26 : vector<8x1xf32> to vector<8x8xf32>
    %28 = arith.mulf %23, %27 : vector<8x8xf32>
    "tpu.trace_start"() <{level = 10 : i32, message = "qk,kd->qd"}> : () -> ()
    %cst_11 = arith.constant dense<0.000000e+00> : vector<8x8xf32>
    %29 = tpu.matmul %28, %17, %cst_11 {dimension_numbers = #tpu.dot_dimension_numbers<[1], [0], [0], [1], [0, 0, 1, 1], [], []>} : vector<8x8xf32>, vector<8x8xf32>, vector<8x8xf32> -> vector<8x8xf32>
    "tpu.trace_stop"() : () -> ()
    %c0_12 = arith.constant 0 : index
    %c0_13 = arith.constant 0 : index
    %30 = vector.load %arg3[%c0_12, %c0_13] : memref<32x32xf32, #tpu.memory_space<vmem>>, vector<8x32xf32>
    %cst_14 = arith.constant dense<0.000000e+00> : vector<8x32xf32>
    %31 = tpu.matmul %29, %30, %cst_14 {dimension_numbers = #tpu.dot_dimension_numbers<[1], [0], [0], [1], [0, 0, 1, 1], [], []>} : vector<8x8xf32>, vector<8x32xf32>, vector<8x32xf32> -> vector<8x32xf32>
    %32 = arith.addf %14, %31 : vector<8x32xf32>
    %33 = vector.extract_strided_slice %13 {offsets = [0, 8], sizes = [8, 8], strides = [1, 1]} : vector<8x96xf32> to vector<8x8xf32>
    %34 = vector.extract_strided_slice %13 {offsets = [0, 40], sizes = [8, 8], strides = [1, 1]} : vector<8x96xf32> to vector<8x8xf32>
    %35 = vector.extract_strided_slice %13 {offsets = [0, 72], sizes = [8, 8], strides = [1, 1]} : vector<8x96xf32> to vector<8x8xf32>
    "tpu.trace_start"() <{level = 10 : i32, message = "qd,kd->qk"}> : () -> ()
    %cst_15 = arith.constant dense<0.000000e+00> : vector<8x8xf32>
    %36 = tpu.matmul %33, %34, %cst_15 {dimension_numbers = #tpu.dot_dimension_numbers<[1], [1], [0], [0], [0, 0, 1, 0], [], []>} : vector<8x8xf32>, vector<8x8xf32>, vector<8x8xf32> -> vector<8x8xf32>
    "tpu.trace_stop"() : () -> ()
    %cst_16 = arith.constant dense<0xFF800000> : vector<8xf32>
    %37 = vector.multi_reduction <maximumf>, %36, %cst_16 [1] : vector<8x8xf32> to vector<8xf32>
    %38 = vector.shape_cast %37 : vector<8xf32> to vector<8x1xf32>
    %39 = vector.broadcast %38 : vector<8x1xf32> to vector<8x8xf32>
    %40 = arith.subf %36, %39 : vector<8x8xf32>
    %41 = math.exp %40 : vector<8x8xf32>
    %cst_17 = arith.constant dense<0.000000e+00> : vector<8xf32>
    %42 = vector.multi_reduction <add>, %41, %cst_17 [1] : vector<8x8xf32> to vector<8xf32>
    %43 = vector.shape_cast %42 : vector<8xf32> to vector<8x1xf32>
    %44 = tpu.reciprocal %43 : vector<8x1xf32> -> vector<8x1xf32>
    %45 = vector.broadcast %44 : vector<8x1xf32> to vector<8x8xf32>
    %46 = arith.mulf %41, %45 : vector<8x8xf32>
    "tpu.trace_start"() <{level = 10 : i32, message = "qk,kd->qd"}> : () -> ()
    %cst_18 = arith.constant dense<0.000000e+00> : vector<8x8xf32>
    %47 = tpu.matmul %46, %35, %cst_18 {dimension_numbers = #tpu.dot_dimension_numbers<[1], [0], [0], [1], [0, 0, 1, 1], [], []>} : vector<8x8xf32>, vector<8x8xf32>, vector<8x8xf32> -> vector<8x8xf32>
    "tpu.trace_stop"() : () -> ()
    %c8 = arith.constant 8 : index
    %c0_19 = arith.constant 0 : index
    %48 = vector.load %arg3[%c8, %c0_19] : memref<32x32xf32, #tpu.memory_space<vmem>>, vector<8x32xf32>
    %cst_20 = arith.constant dense<0.000000e+00> : vector<8x32xf32>
    %49 = tpu.matmul %47, %48, %cst_20 {dimension_numbers = #tpu.dot_dimension_numbers<[1], [0], [0], [1], [0, 0, 1, 1], [], []>} : vector<8x8xf32>, vector<8x32xf32>, vector<8x32xf32> -> vector<8x32xf32>
    %50 = arith.addf %32, %49 : vector<8x32xf32>
    %51 = vector.extract_strided_slice %13 {offsets = [0, 16], sizes = [8, 8], strides = [1, 1]} : vector<8x96xf32> to vector<8x8xf32>
    %52 = vector.extract_strided_slice %13 {offsets = [0, 48], sizes = [8, 8], strides = [1, 1]} : vector<8x96xf32> to vector<8x8xf32>
    %53 = vector.extract_strided_slice %13 {offsets = [0, 80], sizes = [8, 8], strides = [1, 1]} : vector<8x96xf32> to vector<8x8xf32>
    "tpu.trace_start"() <{level = 10 : i32, message = "qd,kd->qk"}> : () -> ()
    %cst_21 = arith.constant dense<0.000000e+00> : vector<8x8xf32>
    %54 = tpu.matmul %51, %52, %cst_21 {dimension_numbers = #tpu.dot_dimension_numbers<[1], [1], [0], [0], [0, 0, 1, 0], [], []>} : vector<8x8xf32>, vector<8x8xf32>, vector<8x8xf32> -> vector<8x8xf32>
    "tpu.trace_stop"() : () -> ()
    %cst_22 = arith.constant dense<0xFF800000> : vector<8xf32>
    %55 = vector.multi_reduction <maximumf>, %54, %cst_22 [1] : vector<8x8xf32> to vector<8xf32>
    %56 = vector.shape_cast %55 : vector<8xf32> to vector<8x1xf32>
    %57 = vector.broadcast %56 : vector<8x1xf32> to vector<8x8xf32>
    %58 = arith.subf %54, %57 : vector<8x8xf32>
    %59 = math.exp %58 : vector<8x8xf32>
    %cst_23 = arith.constant dense<0.000000e+00> : vector<8xf32>
    %60 = vector.multi_reduction <add>, %59, %cst_23 [1] : vector<8x8xf32> to vector<8xf32>
    %61 = vector.shape_cast %60 : vector<8xf32> to vector<8x1xf32>
    %62 = tpu.reciprocal %61 : vector<8x1xf32> -> vector<8x1xf32>
    %63 = vector.broadcast %62 : vector<8x1xf32> to vector<8x8xf32>
    %64 = arith.mulf %59, %63 : vector<8x8xf32>
    "tpu.trace_start"() <{level = 10 : i32, message = "qk,kd->qd"}> : () -> ()
    %cst_24 = arith.constant dense<0.000000e+00> : vector<8x8xf32>
    %65 = tpu.matmul %64, %53, %cst_24 {dimension_numbers = #tpu.dot_dimension_numbers<[1], [0], [0], [1], [0, 0, 1, 1], [], []>} : vector<8x8xf32>, vector<8x8xf32>, vector<8x8xf32> -> vector<8x8xf32>
    "tpu.trace_stop"() : () -> ()
    %c16 = arith.constant 16 : index
    %c0_25 = arith.constant 0 : index
    %66 = vector.load %arg3[%c16, %c0_25] : memref<32x32xf32, #tpu.memory_space<vmem>>, vector<8x32xf32>
    %cst_26 = arith.constant dense<0.000000e+00> : vector<8x32xf32>
    %67 = tpu.matmul %65, %66, %cst_26 {dimension_numbers = #tpu.dot_dimension_numbers<[1], [0], [0], [1], [0, 0, 1, 1], [], []>} : vector<8x8xf32>, vector<8x32xf32>, vector<8x32xf32> -> vector<8x32xf32>
    %68 = arith.addf %50, %67 : vector<8x32xf32>
    %69 = vector.extract_strided_slice %13 {offsets = [0, 24], sizes = [8, 8], strides = [1, 1]} : vector<8x96xf32> to vector<8x8xf32>
    %70 = vector.extract_strided_slice %13 {offsets = [0, 56], sizes = [8, 8], strides = [1, 1]} : vector<8x96xf32> to vector<8x8xf32>
    %71 = vector.extract_strided_slice %13 {offsets = [0, 88], sizes = [8, 8], strides = [1, 1]} : vector<8x96xf32> to vector<8x8xf32>
    "tpu.trace_start"() <{level = 10 : i32, message = "qd,kd->qk"}> : () -> ()
    %cst_27 = arith.constant dense<0.000000e+00> : vector<8x8xf32>
    %72 = tpu.matmul %69, %70, %cst_27 {dimension_numbers = #tpu.dot_dimension_numbers<[1], [1], [0], [0], [0, 0, 1, 0], [], []>} : vector<8x8xf32>, vector<8x8xf32>, vector<8x8xf32> -> vector<8x8xf32>
    "tpu.trace_stop"() : () -> ()
    %cst_28 = arith.constant dense<0xFF800000> : vector<8xf32>
    %73 = vector.multi_reduction <maximumf>, %72, %cst_28 [1] : vector<8x8xf32> to vector<8xf32>
    %74 = vector.shape_cast %73 : vector<8xf32> to vector<8x1xf32>
    %75 = vector.broadcast %74 : vector<8x1xf32> to vector<8x8xf32>
    %76 = arith.subf %72, %75 : vector<8x8xf32>
    %77 = math.exp %76 : vector<8x8xf32>
    %cst_29 = arith.constant dense<0.000000e+00> : vector<8xf32>
    %78 = vector.multi_reduction <add>, %77, %cst_29 [1] : vector<8x8xf32> to vector<8xf32>
    %79 = vector.shape_cast %78 : vector<8xf32> to vector<8x1xf32>
    %80 = tpu.reciprocal %79 : vector<8x1xf32> -> vector<8x1xf32>
    %81 = vector.broadcast %80 : vector<8x1xf32> to vector<8x8xf32>
    %82 = arith.mulf %77, %81 : vector<8x8xf32>
    "tpu.trace_start"() <{level = 10 : i32, message = "qk,kd->qd"}> : () -> ()
    %cst_30 = arith.constant dense<0.000000e+00> : vector<8x8xf32>
    %83 = tpu.matmul %82, %71, %cst_30 {dimension_numbers = #tpu.dot_dimension_numbers<[1], [0], [0], [1], [0, 0, 1, 1], [], []>} : vector<8x8xf32>, vector<8x8xf32>, vector<8x8xf32> -> vector<8x8xf32>
    "tpu.trace_stop"() : () -> ()
    %c24 = arith.constant 24 : index
    %c0_31 = arith.constant 0 : index
    %84 = vector.load %arg3[%c24, %c0_31] : memref<32x32xf32, #tpu.memory_space<vmem>>, vector<8x32xf32>
    %cst_32 = arith.constant dense<0.000000e+00> : vector<8x32xf32>
    %85 = tpu.matmul %83, %84, %cst_32 {dimension_numbers = #tpu.dot_dimension_numbers<[1], [0], [0], [1], [0, 0, 1, 1], [], []>} : vector<8x8xf32>, vector<8x32xf32>, vector<8x32xf32> -> vector<8x32xf32>
    %86 = arith.addf %68, %85 : vector<8x32xf32>
    %87 = vector.broadcast %1 : vector<1x32xf32> to vector<8x32xf32>
    %88 = arith.addf %86, %87 : vector<8x32xf32>
    %c0_33 = arith.constant 0 : index
    %c0_34 = arith.constant 0 : index
    %89 = vector.load %arg1[%c0_33, %c0_34] : memref<8x32xf32, #tpu.memory_space<vmem>>, vector<8x32xf32>
    %90 = arith.addf %89, %88 : vector<8x32xf32>
    %cst_35 = arith.constant dense<0.000000e+00> : vector<8xf32>
    %91 = vector.multi_reduction <add>, %90, %cst_35 [1] : vector<8x32xf32> to vector<8xf32>
    %92 = vector.shape_cast %91 : vector<8xf32> to vector<8x1xf32>
    %cst_36 = arith.constant 3.200000e+01 : f32
    %93 = vector.broadcast %cst_36 : f32 to vector<8x1xf32>
    %94 = arith.divf %92, %93 : vector<8x1xf32>
    %95 = vector.broadcast %94 : vector<8x1xf32> to vector<8x32xf32>
    %96 = arith.subf %90, %95 : vector<8x32xf32>
    %97 = arith.mulf %96, %96 : vector<8x32xf32>
    %cst_37 = arith.constant dense<0.000000e+00> : vector<8xf32>
    %98 = vector.multi_reduction <add>, %97, %cst_37 [1] : vector<8x32xf32> to vector<8xf32>
    %99 = vector.shape_cast %98 : vector<8xf32> to vector<8x1xf32>
    %cst_38 = arith.constant 3.200000e+01 : f32
    %100 = vector.broadcast %cst_38 : f32 to vector<8x1xf32>
    %101 = arith.divf %99, %100 : vector<8x1xf32>
    %102 = vector.broadcast %94 : vector<8x1xf32> to vector<8x32xf32>
    %103 = arith.subf %90, %102 : vector<8x32xf32>
    %cst_39 = arith.constant 9.99999974E-6 : f32
    %104 = vector.broadcast %cst_39 : f32 to vector<8x1xf32>
    %105 = arith.addf %101, %104 : vector<8x1xf32>
    %106 = math.rsqrt %105 : vector<8x1xf32>
    %107 = vector.broadcast %106 : vector<8x1xf32> to vector<8x32xf32>
    %108 = arith.mulf %103, %107 : vector<8x32xf32>
    %109 = vector.broadcast %4 : vector<1x32xf32> to vector<8x32xf32>
    %110 = arith.mulf %108, %109 : vector<8x32xf32>
    %111 = vector.broadcast %5 : vector<1x32xf32> to vector<8x32xf32>
    %112 = arith.addf %110, %111 : vector<8x32xf32>
    %c0_40 = arith.constant 0 : index
    %c0_41 = arith.constant 0 : index
    %113 = vector.load %arg4[%c0_40, %c0_41] : memref<32x32xf32, #tpu.memory_space<vmem>>, vector<32x32xf32>
    %cst_42 = arith.constant dense<0.000000e+00> : vector<8x32xf32>
    %114 = tpu.matmul %112, %113, %cst_42 {dimension_numbers = #tpu.dot_dimension_numbers<[1], [0], [0], [1], [0, 0, 1, 1], [], []>} : vector<8x32xf32>, vector<32x32xf32>, vector<8x32xf32> -> vector<8x32xf32>
    %115 = vector.broadcast %2 : vector<1x32xf32> to vector<8x32xf32>
    %116 = arith.addf %114, %115 : vector<8x32xf32>
    %cst_43 = arith.constant 5.000000e-01 : f32
    %117 = vector.broadcast %cst_43 : f32 to vector<8x32xf32>
    %118 = arith.mulf %117, %116 : vector<8x32xf32>
    %cst_44 = arith.constant 0.707106769 : f32
    %119 = vector.broadcast %cst_44 : f32 to vector<8x32xf32>
    %120 = arith.mulf %116, %119 : vector<8x32xf32>
    %121 = math.erf %120 : vector<8x32xf32>
    %cst_45 = arith.constant 1.000000e+00 : f32
    %122 = vector.broadcast %cst_45 : f32 to vector<8x32xf32>
    %123 = arith.addf %122, %121 : vector<8x32xf32>
    %124 = arith.mulf %118, %123 : vector<8x32xf32>
    %c0_46 = arith.constant 0 : index
    %c0_47 = arith.constant 0 : index
    %125 = vector.load %arg5[%c0_46, %c0_47] : memref<32x32xf32, #tpu.memory_space<vmem>>, vector<32x32xf32>
    %cst_48 = arith.constant dense<0.000000e+00> : vector<8x32xf32>
    %126 = tpu.matmul %124, %125, %cst_48 {dimension_numbers = #tpu.dot_dimension_numbers<[1], [0], [0], [1], [0, 0, 1, 1], [], []>} : vector<8x32xf32>, vector<32x32xf32>, vector<8x32xf32> -> vector<8x32xf32>
    %127 = vector.broadcast %3 : vector<1x32xf32> to vector<8x32xf32>
    %128 = arith.addf %126, %127 : vector<8x32xf32>
    %129 = arith.addf %112, %128 : vector<8x32xf32>
    %cst_49 = arith.constant dense<0.000000e+00> : vector<8xf32>
    %130 = vector.multi_reduction <add>, %129, %cst_49 [1] : vector<8x32xf32> to vector<8xf32>
    %131 = vector.shape_cast %130 : vector<8xf32> to vector<8x1xf32>
    %cst_50 = arith.constant 3.200000e+01 : f32
    %132 = vector.broadcast %cst_50 : f32 to vector<8x1xf32>
    %133 = arith.divf %131, %132 : vector<8x1xf32>
    %134 = vector.broadcast %133 : vector<8x1xf32> to vector<8x32xf32>
    %135 = arith.subf %129, %134 : vector<8x32xf32>
    %136 = arith.mulf %135, %135 : vector<8x32xf32>
    %cst_51 = arith.constant dense<0.000000e+00> : vector<8xf32>
    %137 = vector.multi_reduction <add>, %136, %cst_51 [1] : vector<8x32xf32> to vector<8xf32>
    %138 = vector.shape_cast %137 : vector<8xf32> to vector<8x1xf32>
    %cst_52 = arith.constant 3.200000e+01 : f32
    %139 = vector.broadcast %cst_52 : f32 to vector<8x1xf32>
    %140 = arith.divf %138, %139 : vector<8x1xf32>
    %141 = vector.broadcast %133 : vector<8x1xf32> to vector<8x32xf32>
    %142 = arith.subf %129, %141 : vector<8x32xf32>
    %cst_53 = arith.constant 9.99999974E-6 : f32
    %143 = vector.broadcast %cst_53 : f32 to vector<8x1xf32>
    %144 = arith.addf %140, %143 : vector<8x1xf32>
    %145 = math.rsqrt %144 : vector<8x1xf32>
    %146 = vector.broadcast %145 : vector<8x1xf32> to vector<8x32xf32>
    %147 = arith.mulf %142, %146 : vector<8x32xf32>
    %148 = vector.broadcast %6 : vector<1x32xf32> to vector<8x32xf32>
    %149 = arith.mulf %147, %148 : vector<8x32xf32>
    %150 = vector.broadcast %7 : vector<1x32xf32> to vector<8x32xf32>
    %151 = arith.addf %149, %150 : vector<8x32xf32>
    %c0_54 = arith.constant 0 : index
    %c0_55 = arith.constant 0 : index
    %152 = vector.load %arg8[%c0_54, %c0_55] : memref<8x32xf32, #tpu.memory_space<vmem>>, vector<8x32xf32>
    tpu.vector_store %arg8[%c0_54, %c0_55], %151 {strides = array<i32>} : memref<8x32xf32, #tpu.memory_space<vmem>>, vector<8x32xf32>,
    return
  }
  func.func @transform_0(%arg0: i32) -> (i32, i32) {
    %c0_i32 = arith.constant 0 : i32
    %c0_i32_0 = arith.constant 0 : i32
    return %arg0, %c0_i32 : i32, i32
  }
  func.func @transform_1(%arg0: i32) -> (i32, i32) {
    %c0_i32 = arith.constant 0 : i32
    %c0_i32_0 = arith.constant 0 : i32
    %c0_i32_1 = arith.constant 0 : i32
    return %c0_i32, %c0_i32_0 : i32, i32
  }
  func.func @transform_2(%arg0: i32) -> (i32, i32) {
    %c0_i32 = arith.constant 0 : i32
    %c0_i32_0 = arith.constant 0 : i32
    %c0_i32_1 = arith.constant 0 : i32
    return %c0_i32, %c0_i32_0 : i32, i32
  }
  func.func @transform_3(%arg0: i32) -> (i32, i32) {
    %c0_i32 = arith.constant 0 : i32
    %c0_i32_0 = arith.constant 0 : i32
    %c0_i32_1 = arith.constant 0 : i32
    return %c0_i32, %c0_i32_0 : i32, i32
  }
  func.func @transform_4(%arg0: i32) -> (i32, i32) {
    %c0_i32 = arith.constant 0 : i32
    %c0_i32_0 = arith.constant 0 : i32
    %c0_i32_1 = arith.constant 0 : i32
    return %c0_i32, %c0_i32_0 : i32, i32
  }
  func.func @transform_5(%arg0: i32) -> (i32, i32) {
    %c0_i32 = arith.constant 0 : i32
    %c0_i32_0 = arith.constant 0 : i32
    %c0_i32_1 = arith.constant 0 : i32
    return %c0_i32, %c0_i32_0 : i32, i32
  }
  func.func @transform_6(%arg0: i32) -> (i32, i32) {
    %c0_i32 = arith.constant 0 : i32
    %c0_i32_0 = arith.constant 0 : i32
    %c0_i32_1 = arith.constant 0 : i32
    return %c0_i32, %c0_i32_0 : i32, i32
  }
  func.func @transform_7(%arg0: i32) -> (i32, i32) {
    %c0_i32 = arith.constant 0 : i32
    %c0_i32_0 = arith.constant 0 : i32
    return %arg0, %c0_i32 : i32, i32
  }
}

</mosaic_0001>

<bundles_post_ra>
// kernel: tpu_custom_call.1
= control target key start
LH: loop header
LB: loop body
LE: loop exit
PB: predicated region body
PF: predicated region fallthrough
CT: control target
= control target key end

     0   :  { %s1866_s0 = inlined_call_operand.hbm [shape: f32[16,32], index: 0, kind: input, shape index: {}]   ;;  %s1867_s1 = inlined_call_operand.hbm [shape: f32[32,96], index: 1, kind: input, shape index: {}]   ;;  %s1868_s2 = inlined_call_operand.hbm [shape: f32[32,32], index: 2, kind: input, shape index: {}]   ;;  %s1869_s3 = inlined_call_operand.hbm [shape: f32[32,32], index: 3, kind: input, shape index: {}]   ;;  %s1870_s4 = inlined_call_operand.hbm [shape: f32[32,32], index: 4, kind: input, shape index: {}]   ;;  %s1871_s5 = inlined_call_operand.vmem [shape: f32[1,96], index: 5, kind: input, shape index: {}]   ;;  %s1872_s6 = inlined_call_operand.hbm [shape: f32[8,32], index: 6, kind: input, shape index: {}]   ;;  %s1873_s7 = inlined_call_operand.hbm [shape: f32[16,32], index: 7, kind: output, shape index: {}]  }
   0x1   :  { %1874 = sst [smem:[#allocation19_spill]] %s1867_s1 }
   0x2   :  { %12 = vsyncpa [#allocation3], 0 }
   0x3   :  { %14 = vsyncpa [#allocation3 + $0x1], 0 }
   0x4   :  { %15 = vsyncpa [#allocation6], 0 }
   0x5   :  { %16 = vsyncpa [#allocation9], 0 }
   0x6   :  { %17 = vsyncpa [#allocation12], 0 }
   0x7   :  { %18 = vsyncpa [#allocation4], 0 }
   0x8   :  { %20 = vsyncpa [#allocation4 + $0x1], 0  ;;  %s1617_s24 = smov 0   ;;  %s1619_s25 = smov 0  }
   0x9   :  { %s1621_s26 = smov 0   ;;  %s1623_s27 = smov 0  }
   0xa LB: > { %s1875_s1 = sld [smem:[#allocation19_spill]]  ;;  %s1641_s8 = sadd.s32 4294967295, %s1556_s27   ;;  %s1556_s27 = sphi %s1623_s27, %s1886_s27   ;;  %s1552_s26 = sphi %s1621_s26, %s1885_s26   ;;  %s1548_s25 = sphi %s1619_s25, %s1884_s25   ;;  %s1544_s24 = sphi %s1617_s24, %s1883_s24  }
   0xb   : > { %p1121_p0 = scmp.ge.s32.totalorder %s1556_s27, 1  ;;  %p47_p1 = scmp.eq.s32.totalorder %s1641_s8, 0 }
   0xc   : > { %p209_p2 = scmp.lt.s32.totalorder %s1556_s27, 3  ;;  %s1558_s10 = smov [#allocation5]  }
   0xd   : > { %s222_s11 = sshll.u32 %s1558_s10, 4  ;;  %s248_s14 = sshll.u32 %s1869_s3, 4  ;;  %s223_s11 = int_to_ptr.vmem [resolvable:$true] %s222_s11  ;;  %s249_s14 = int_to_ptr.hbm [resolvable:$true] %s248_s14 }
   0xe   : > { %p1646_p3 = pnand %p1121_p0, %p209_p2  ;;  %s234_s18 = sshll.u32 %s1868_s2, 4  ;;  %s235_s18 = int_to_ptr.hbm [resolvable:$true] %s234_s18 }
   0xf   : > { %s1559_s19 = smov [#allocation8]   ;;  %s1560_s21 = smov 128  }
  0x10   : > { %s220_s30 = sshll.u32 %s1875_s1, 4  ;;  %p1186_p4 = pneg %p1646_p3  ;;  %s221_s30 = int_to_ptr.hbm [resolvable:$true] %s220_s30 }
  0x11   : > { %s250_s20 = sshll.u32 %s1559_s19, 4  ;;  %s1561_s22 = smov 8   ;;  %s251_s20 = int_to_ptr.vmem [resolvable:$true] %s250_s20 }
  0x12   : > { %p1658_p6 = pnand %p1186_p4, %p47_p1  ;;  %s262_s29 = sshll.u32 %s1870_s4, 4  ;;  %s263_s29 = int_to_ptr.hbm [resolvable:$true] %s262_s29 }
  0x13   : > { %s1562_s10 = smov [#allocation7]   ;;  %s280_s16 = sshll.u32 %s1872_s6, 4  ;;  %s281_s16 = int_to_ptr.hbm [resolvable:$true] %s280_s16 }
  0x14   : > { %1189 = dma.hbm_to_vmem [thread:$0]  (!%p1658_p6), %s221_s30, 512, %s223_s11, [#allocation6], %s1560_s21, %s1560_s21, %s1561_s22  }
  0x15   : > { %1195 = dma.hbm_to_vmem [thread:$0]  (!%p1658_p6), %s249_s14, 512, %s251_s20, [#allocation9], %s1560_s21, %s1560_s21, %s1561_s22  }
  0x16   : > { %s236_s12 = sshll.u32 %s1562_s10, 4  ;;  %s1563_s30 = smov [#allocation10]   ;;  %s237_s12 = int_to_ptr.vmem [resolvable:$true] %s236_s12 }
  0x17   : > { %1192 = dma.hbm_to_vmem [thread:$0]  (!%p1658_p6), %s235_s18, 512, %s237_s12, [#allocation6], %s1560_s21, %s1560_s21, %s1561_s22  }
  0x18   : > { %s264_s11 = sshll.u32 %s1563_s30, 4  ;;  %s1564_s17 = smov [#allocation11]   ;;  %s265_s11 = int_to_ptr.vmem [resolvable:$true] %s264_s11 }
  0x19   : > { %1198 = dma.hbm_to_vmem [thread:$0]  (!%p1658_p6), %s263_s29, 512, %s265_s11, [#allocation9], %s1560_s21, %s1560_s21, %s1561_s22  }
  0x1a   : > { %s282_s19 = sshll.u32 %s1564_s17, 4  ;;  %s1120_s18 = sadd.s32 4294967294, %s1556_s27   ;;  %s283_s19 = int_to_ptr.vmem [resolvable:$true] %s282_s19 }
  0x1b   : > { %1201 = dma.hbm_to_vmem [thread:$0]  (!%p1658_p6), %s281_s16, 128, %s283_s19, [#allocation12]  }
  0x1c   : > { %s1683_s20 = sadd.s32 1, %s1556_s27   ;;  %s33_s23 = sadd.s32 1, %s1552_s26 }
  0x1d   : > { %s30_s28 = ssub.s32 %s1556_s27, %s1683_s20  ;;  %p40_p7 = scmp.ne.s32.totalorder %s1552_s26, %s1548_s25 }
  0x1e   : > { %p31_p8 = scmp.eq.s32.totalorder %s30_s28, 0  ;;  %p41_p9 = scmp.eq.s32.totalorder %s1556_s27, 0 }
  0x1f   : > { %p46_p10 = scmp.ne.s32.totalorder %s1548_s25, %s1544_s24  ;;  %p196_p11 = scmp.eq.s32.totalorder %s1641_s8, 1 }
  0x20   : > { %s1695_s21 = scalar_select %p31_p8, %s1552_s26, %s33_s23  }
  0x21   : > { %p1699_p12 = por %p47_p1, %p46_p10  ;;  %p1703_p13 = por %p196_p11, %p40_p7 }
  0x22   : > { %p202_p0 = scmp.eq.s32.totalorder %s1120_s18, 1  ;;  %p42_p2 = por %p41_p9, %p40_p7 }
  0x23   : > { %s293_s29 = sand.u32 1, %s1552_s26   ;;  %p1215_p6 = scmp.lt.s32.totalorder %s1556_s27, 2 }
  0x24   : > { %p1708_p4 = por %p202_p0, %p46_p10  ;;  %s1128_s12 = sshll.u32 %s293_s29, 3 }
  0x25   : > { %s1129_s30 = sshll.u32 %s1556_s27, 3  ;;  %s297_s17 = scalar_lea.vmem [#allocation2], %s1128_s12 }
  0x26   : > { %s301_s14 = scalar_lea.hbm %s1866_s0, %s1129_s30  ;;  %s305_s19 = sshll.u32 %s297_s17, 4  ;;  %s306_s19 = int_to_ptr.vmem [resolvable:$true] %s305_s19 }
  0x27   : > { %s303_s16 = sshll.u32 %s301_s14, 4  ;;  %p1717_p8 = pnand %p1215_p6, %p42_p2  ;;  %s304_s16 = int_to_ptr.hbm [resolvable:$true] %s303_s16 }
  0x28   : > { %s294_s23 = scalar_lea.sflag [#allocation3], %s293_s29  ;;  %s1448_s28 = sshra.s32 %s304_s16, 4  ;;  %s1449_s28 = int_to_ptr.hbm [resolvable:$true] %s1448_s28 }
  0x29   : > { %s1450_s1 = scalar_lea.hbm %s1449_s28, 8  ;;  %p1452_p9 = pneg %p1717_p8 }
  0x2a   : > { %p1451_p7 = scmp.ne.s32.totalorder %s1449_s28, %s1450_s1  ;;  %s1455_s12 = scalar_lea.hbm %s1866_s0, 16 }
  0x2b   : > { %p1456_p0 = scmp.lt.s32.totalorder %s1449_s28, %s1866_s0  ;;  %p1457_p2 = scmp.lt.s32.totalorder %s1455_s12, %s1450_s1 }
  0x2c   : > { %p1453_p10 = pnand %p1452_p9, %p1451_p7 }
  0x2d   : > { %p1458_p6 = por %p1457_p2, %p1456_p0 }
  0x2e   : > { %p1454_p11 = pneg %p1453_p10 }
  0x30   : > { %p1459_p5 = pnand %p1458_p6, %p1454_p11 }
  0x32   : > { %1462 = shalt.err (!%p1459_p5)
}
  0x33   : > { %1205 = dma.hbm_to_vmem [thread:$0]  (!%p1717_p8), %s304_s16, 128, %s306_s19, %s294_s23  }
  0x34   : > { %314 = sbr.rel (%p1646_p3) target bundleno = 2371 (0x943), region = 48  ;;  %s1734_s29 = sand.u32 (!%p1646_p3), 1, %s1548_s25  }
  0x35   : > { %s1131_s17 = sshll.u32 (!%p1646_p3), %s1734_s29, 3  ;;  %s317_s30 = scalar_lea.sflag (!%p1646_p3), [#allocation3], %s1734_s29 }
  0x36   : > { %s320_s1 = scalar_lea.vmem (!%p1646_p3), [#allocation2], %s1131_s17 }
  0x39   : > { %1523 = dma.done.wait (%p1699_p12), %s317_s30, 128  }
  0x3a   : > { %1525 = vsyncadd (%p1699_p12), %s317_s30, 4294967168 }
  0x3b   : > { %1527 = dma.done.wait (%p47_p1), [#allocation6], 1024  }
  0x3c   : > { %1529 = vsyncadd (%p47_p1), [#allocation6], 4294966272 }
  0x3d   : > { %1531 = dma.done.wait (%p47_p1), [#allocation9], 1024  }
  0x3e   : > { %1533 = vsyncadd (%p47_p1), [#allocation9], 4294966272 }
  0x3f   : > { %1535 = dma.done.wait (%p47_p1), [#allocation12], 128  }
  0x40   : > { %1537 = vsyncadd (%p47_p1), [#allocation12], 4294967168  ;;  %v382_v0 = vld [vmem:[#allocation5 + $0x18] sm:$0xff]  ;;  %v381_v1 = vld [vmem:[#allocation5 + $0x10] sm:$0xff]  ;;  %vm387_vm0 = vcmask 261120   ;;  %s1565_s16 = smov 88  }
  0x41   : > { %403 = vmatpush.msra.mxu0 %v382_v0  ;;  %v380_v2 = vld [vmem:[#allocation5 + $0x8] sm:$0xff]  ;;  %v379_v3 = vld [vmem:[#allocation5] sm:$0xff]  ;;  %v1756_v4 = vld [vmem:[%s320_s1] sm:$0xff]  ;;  %s1566_s19 = smov 96   ;;  %s1567_s18 = smov 120   ;;  %vm414_vm1 = vcmask 64512  }
  0x42   : > { %v1273_v5 = vld [vmem:[%s1871_s5] ss:$0 sm:$0xff]  ;;  %s1568_s23 = smov 72   ;;  %s1569_s28 = smov 104   ;;  %v489_v8 = vld [vmem:[#allocation7] sm:$0xff] }
  0x43   : > { %404 = vmatpush.msra.mxu0 %v381_v1  ;;  %s1570_s11 = smov 80   ;;  %s1571_s12 = smov 56  }
  0x44   : > { %s1572_s13 = smov 64   ;;  %s1573_s14 = smov 112  }
  0x45   : > { %405 = vmatpush.msra.mxu0 %v380_v2  ;;  %s1574_s30 = smov 40   ;;  %s1575_s1 = smov 48  }
  0x46   : > { %s1159_s9 = sshll.u32 %s1641_s8, 3  ;;  %s987_s8 = scalar_lea.sflag [#allocation4], %s1734_s29 }
  0x47   : > { %406 = vmatpush.msra.mxu0 %v379_v3 }
  0x48   : > { %1138 = vmatmul.msk.f32.vlgmr.msra.gmra.mxu0 %vm387_vm0, %v1756_v4 }
  0xc5   : > { %v408_v6 = vpop.f32.mrf.mxu0 }
  0xc6   : > { %v1763_v7 = vadd.f32 %v1273_v5, %v408_v6 }
  0xc8   : > { %492 = vrot.lane.b32.xlu2 %v1763_v7, %s1565_s16  ;;  %412 = vrot.lane.b32.xlu0 %v1763_v7, %s1566_s19  ;;  %s997_s19 = scalar_lea.hbm %s1873_s7, %s1159_s9 }
  0xd0   : > { %490 = vrot.lane.b32.xlu2 %v1763_v7, %s1567_s18  ;;  %s376_s18 = scalar_lea.vmem [#allocation13], %s1131_s17  ;;  %s1498_s17 = scalar_lea.hbm %s1873_s7, 16 }
  0xd8   : > { %720 = vrot.lane.b32.xlu2 %v1763_v7, %s1568_s23  ;;  %s999_s23 = sshll.u32 %s376_s18, 4  ;;  %s1000_s23 = int_to_ptr.vmem [resolvable:$true] %s999_s23 }
  0xe0   : > { %718 = vrot.lane.b32.xlu2 %v1763_v7, %s1569_s28  ;;  %s1001_s28 = sshll.u32 %s997_s19, 4  ;;  %s1002_s28 = int_to_ptr.hbm [resolvable:$true] %s1001_s28 }
  0xe8   : > { %617 = vrot.lane.b32.xlu2 %v1763_v7, %s1570_s11  ;;  %s1492_s11 = sshra.s32 %s1002_s28, 4  ;;  %s1493_s11 = int_to_ptr.hbm [resolvable:$true] %s1492_s11 }
  0xe9   : > { %p1499_p12 = scmp.lt.s32.totalorder %s1493_s11, %s1873_s7 }
 0x122   : > { %v493_v9 = vpop.permute.xlu2 %492 }
 0x123   : > { %1142 = vmatpush.xpose.msk.msra.mxu3 %vm414_vm1, %v493_v9 }
 0x127   : > { %610 = vmatpush.msrb.mxu3 %v489_v8 }
 0x12a   : > { %v491_v10 = vpop.permute.xlu2 %490 }
 0x12b   : > { %1143 = vmatmul.msk.f32.vlgmr.msra.gmra.mxu3 %vm414_vm1, %v491_v10 }
 0x132   : > { %v721_v11 = vpop.permute.xlu2 %720 }
 0x133   : > { %1151 = vmatpush.xpose.msk.msra.mxu3 %vm414_vm1, %v721_v11 }
 0x13a   : > { %v719_v12 = vpop.permute.xlu2 %718  ;;  %v413_v13 = vpop.permute.xlu0 %412 }
 0x13b   : > { %1139 = vmatpush.xpose.msk.msra.mxu1 %vm414_vm1, %v413_v13 }
 0x13e   : > { %1140 = vmatmul.msk.f32.vlgmr.msra.gmra.mxu1 %vm414_vm1, %v1763_v7 }
 0x142   : > { %v618_v14 = vpop.permute.xlu2 %617 }
 0x143   : > { %1147 = vmatpush.xpose.msk.msrb.mxu0 %vm414_vm1, %v618_v14  ;;  %v568_v14 = vld [vmem:[#allocation7 + $0x8] sm:$0xff] }
 0x144   : > { %587 = vmatpush.msrb.mxu1 %v568_v14 }
 0x1ae   : > { %v515_v15 = vpop.f32.mrf.mxu3 }
 0x1af   : > { %v518_v16 = vsel %vm414_vm1, %v515_v15, -inf }
 0x1b0   : > { %519 = vmax.xlane.f32.xlu2 %v518_v16 }
 0x1bb   : > { %v436_v17 = vpop.f32.mrf.mxu1 }
 0x1bc   : > { %v439_v18 = vsel %vm414_vm1, %v436_v17, -inf }
 0x1bd   : > { %440 = vmax.xlane.f32.xlu0 %v439_v18 }
 0x1c8   : > { %542 = vrot.lane.b32.xlu2 %v1763_v7, %s1571_s12  ;;  %s1494_s12 = scalar_lea.hbm %s1493_s11, 8 }
 0x1c9   : > { %p1495_p1 = scmp.ne.s32.totalorder %s1493_s11, %s1494_s12  ;;  %p1500_p8 = scmp.lt.s32.totalorder %s1498_s17, %s1494_s12 }
 0x1cb   : > { %p1496_p3 = pnand %p1495_p1, %p1703_p13  ;;  %p1501_p7 = por %p1500_p8, %p1499_p12 }
 0x1cd   : > { %p1497_p5 = pneg %p1496_p3 }
 0x1cf   : > { %p1502_p9 = pnand %p1501_p7, %p1497_p5 }
 0x223   : > { %v520_v31 = vpop.xlane.xlu2 %519 }
 0x224   : > { %v521_v43 = vsub.f32 %v515_v15, %v520_v31 }
 0x226   : > { %v522_v46 = vmul.f32 1.442695, %v521_v43 }
 0x22b   : > { %v543_v38 = vpop.permute.xlu2 %542 }
 0x230   : > { %v441_v19 = vpop.xlane.xlu0 %440 }
 0x231   : > { %v442_v20 = vsub.f32 %v436_v17, %v441_v19 }
 0x233   : > { %v443_v21 = vmul.f32 1.442695, %v442_v20 }
 0x235   : > { %1274 = vpow2.f32 %v443_v21 }
 0x23b   : > { %v1275_v22 = vpop.eup %1274 }
 0x23c   : > { %v445_v23 = vsel %vm414_vm1, %v1275_v22, 0.0 }
 0x23d   : > { %446 = vadd.xlane.f32.xlu1 %v445_v23 }
 0x256   : > { %463 = vrot.lane.b32.xlu1 %v1763_v7, %s1572_s13 }
 0x25e   : > { %615 = vrot.lane.b32.xlu1 %v1763_v7, %s1573_s14 }
 0x2b0   : > { %v447_v24 = vpop.xlane.xlu1 %446 }
 0x2b1   : > { %1276 = vrcp.f32 %v447_v24  ;;  %v459_v30 = vand.u32 2147483648, %v447_v24  ;;  %vm453_vm3 = vweird.f32 %v447_v24  ;;  %v457_v32 = vand.u32 2147483647, %v447_v24 }
 0x2b2   : > { %1278 = vpow2.f32 %v522_v46 }
 0x2b3   : > { %v460_v34 = vor.u32 1.1754944e-38, %v459_v30  ;;  %vm458_vm5 = vcmp.eq.f32.partialorder %v457_v32, 8.507059e+37 }
 0x2b7   : > { %v1277_v25 = vpop.eup %1276 }
 0x2b8   : > { %v449_v26 = vmul.f32 %v1277_v25, %v447_v24  ;;  %vm454_vm2 = vweird.f32 %v1277_v25  ;;  %v1279_v52 = vpop.eup %1278 }
 0x2b9   : > { %vm455_vm4 = vmor %vm453_vm3, %vm454_vm2  ;;  %v524_v53 = vsel %vm414_vm1, %v1279_v52, 0.0 }
 0x2ba   : > { %v450_v27 = vsub.f32 1.0, %v449_v26 }
 0x2bc   : > { %v451_v28 = vmul.f32 %v1277_v25, %v450_v27 }
 0x2be   : > { %v452_v29 = vadd.f32 %v1277_v25, %v451_v28 }
 0x2c0   : > { %v456_v33 = vsel %vm455_vm4, %v1277_v25, %v452_v29 }
 0x2c1   : > { %v461_v35 = vsel %vm458_vm5, %v460_v34, %v456_v33 }
 0x2c2   : > { %v462_v37 = vmul.f32 %v1275_v22, %v461_v35 }
 0x2c8   : > { %v464_v36 = vpop.permute.xlu1 %463 }
 0x2c9   : > { %484 = vmatpush.msra.mxu2 %v464_v36 }
 0x2ca   : > { %1141 = vmatmul.msk.f32.vlgmr.msra.gmra.mxu2 %vm414_vm1, %v462_v37  ;;  %v796_v37 = vld [vmem:[#allocation7 + $0x18] sm:$0xff] }
 0x2cb   : > { %563 = vmatpush.msrb.mxu2 %v543_v38  ;;  %v693_v38 = vld [vmem:[#allocation7 + $0x10] sm:$0xff] }
 0x2cc   : > { %712 = vmatpush.msra.mxu1 %v693_v38 }
 0x2d0   : > { %v616_v39 = vpop.permute.xlu1 %615 }
 0x2d1   : > { %1148 = vmatmul.msk.f32.vlgmr.msrb.gmra.mxu0 %vm414_vm1, %v616_v39 }
 0x34d   : > { %v486_v40 = vpop.f32.mrf.mxu2 }
 0x34e   : > { %1146 = vmatmul.msk.f32.vlgmr.msrb.gmra.mxu3 %vm414_vm1, %v486_v40  ;;  %v640_v41 = vpop.f32.mrf.mxu0 }
 0x34f   : > { %v643_v42 = vsel %vm414_vm1, %v640_v41, -inf }
 0x350   : > { %644 = vmax.xlane.f32.xlu1 %v643_v42  ;;  %v1807_v42 = vld [vmem:[#allocation11] sm:$0xff] }
 0x351   : > { %v854_v14 = vperm.slane %v1807_v42, 3 }
 0x356   : > { %1152 = vmatmul.msk.f32.vlgmr.msra.gmra.mxu3 %vm414_vm1, %v719_v12 }
 0x369   : > { %770 = vrot.lane.b32.xlu1 %v1763_v7, %s1574_s30 }
 0x3c3   : > { %v645_v45 = vpop.xlane.xlu1 %644 }
 0x3c4   : > { %v646_v47 = vsub.f32 %v640_v41, %v645_v45 }
 0x3c6   : > { %v647_v51 = vmul.f32 1.442695, %v646_v47  ;;  %v821_v47 = vperm.slane %v1807_v42, 0 }
 0x3c8   : > { %1280 = vpow2.f32 %v647_v51 }
 0x3ce   : > { %v1794_v54 = vpop.eup %1280 }
 0x3cf   : > { %v649_v55 = vsel %vm414_vm1, %v1794_v54, 0.0 }
 0x3d1   : > { %v1790_v44 = vpop.f32.mrf.mxu3 }
 0x3d9   : > { %v743_v48 = vpop.f32.mrf.mxu3 }
 0x3da   : > { %v746_v49 = vsel %vm414_vm1, %v743_v48, -inf }
 0x3db   : > { %747 = vmax.xlane.f32.xlu0 %v746_v49  ;;  %v771_v50 = vpop.permute.xlu1 %770 }
 0x3dc   : > { %791 = vmatpush.msra.mxu0 %v771_v50 }
 0x3e3   : > { %525 = vadd.xlane.f32.xlu0 %v524_v53  ;;  %v1576_v53 = vmov 32.0  }
 0x3eb   : > { %650 = vadd.xlane.f32.xlu0 %v649_v55 }
 0x44e   : > { %v748_v56 = vpop.xlane.xlu0 %747 }
 0x44f   : > { %v749_v57 = vsub.f32 %v743_v48, %v748_v56 }
 0x451   : > { %v750_v58 = vmul.f32 1.442695, %v749_v57 }
 0x453   : > { %1282 = vpow2.f32 %v750_v58 }
 0x456   : > { %v526_v59 = vpop.xlane.xlu0 %525 }
 0x457   : > { %1284 = vrcp.f32 %v526_v59  ;;  %v538_v1 = vand.u32 2147483648, %v526_v59  ;;  %v536_v3 = vand.u32 2147483647, %v526_v59  ;;  %vm532_vm7 = vweird.f32 %v526_v59 }
 0x459   : > { %v1283_v60 = vpop.eup %1282  ;;  %v539_v6 = vor.u32 1.1754944e-38, %v538_v1  ;;  %vm537_vm9 = vcmp.eq.f32.partialorder %v536_v3, 8.507059e+37  ;;  %v859_v1 = vld [vmem:[#allocation8 + $0x8] sm:$0xff] }
 0x45a   : > { %v752_v61 = vsel %vm414_vm1, %v1283_v60, 0.0 }
 0x45b   : > { %753 = vadd.xlane.f32.xlu0 %v752_v61 }
 0x45d   : > { %v1285_v62 = vpop.eup %1284 }
 0x45e   : > { %v528_v63 = vmul.f32 %v1285_v62, %v526_v59  ;;  %vm533_vm6 = vweird.f32 %v1285_v62  ;;  %v651_v11 = vpop.xlane.xlu0 %650 }
 0x45f   : > { %vm534_vm8 = vmor %vm532_vm7, %vm533_vm6  ;;  %1286 = vrcp.f32 %v651_v11  ;;  %v663_v21 = vand.u32 2147483648, %v651_v11  ;;  %vm657_vm11 = vweird.f32 %v651_v11  ;;  %v661_v23 = vand.u32 2147483647, %v651_v11 }
 0x460   : > { %v529_v0 = vsub.f32 1.0, %v528_v63  ;;  %v861_v63 = vld [vmem:[#allocation8 + $0x18] sm:$0xff] }
 0x461   : > { %v664_v27 = vor.u32 1.1754944e-38, %v663_v21  ;;  %vm662_vm15 = vcmp.eq.f32.partialorder %v661_v23, 8.507059e+37 }
 0x462   : > { %v530_v2 = vmul.f32 %v1285_v62, %v529_v0  ;;  %v860_v0 = vld [vmem:[#allocation8 + $0x10] sm:$0xff] }
 0x464   : > { %v531_v5 = vadd.f32 %v1285_v62, %v530_v2  ;;  %v858_v2 = vld [vmem:[#allocation8] sm:$0xff] }
 0x465   : > { %v1287_v12 = vpop.eup %1286 }
 0x466   : > { %v535_v8 = vsel %vm534_vm8, %v1285_v62, %v531_v5  ;;  %v653_v13 = vmul.f32 %v1287_v12, %v651_v11  ;;  %vm658_vm10 = vweird.f32 %v1287_v12 }
 0x467   : > { %v540_v9 = vsel %vm537_vm9, %v539_v6, %v535_v8  ;;  %vm659_vm12 = vmor %vm657_vm11, %vm658_vm10 }
 0x468   : > { %v541_v10 = vmul.f32 %v1279_v52, %v540_v9  ;;  %v654_v16 = vsub.f32 1.0, %v653_v13 }
 0x46a   : > { %1144 = vmatmul.msk.f32.vlgmr.msrb.gmra.mxu2 %vm414_vm1, %v541_v10  ;;  %v655_v17 = vmul.f32 %v1287_v12, %v654_v16 }
 0x46c   : > { %v656_v20 = vadd.f32 %v1287_v12, %v655_v17  ;;  %v856_v17 = vperm.slane %v1807_v42, 4 }
 0x46e   : > { %v660_v26 = vsel %vm659_vm12, %v1287_v12, %v656_v20  ;;  %v862_v20 = vperm.slane %v1807_v42, 1 }
 0x46f   : > { %667 = vrot.lane.b32.xlu0 %v1763_v7, %s1575_s1  ;;  %v665_v30 = vsel %vm662_vm15, %v664_v27, %v660_v26 }
 0x470   : > { %v666_v35 = vmul.f32 %v1794_v54, %v665_v30 }
 0x4ce   : > { %v754_v15 = vpop.xlane.xlu0 %753 }
 0x4cf   : > { %1288 = vrcp.f32 %v754_v15  ;;  %v766_v24 = vand.u32 2147483648, %v754_v15  ;;  %v764_v25 = vand.u32 2147483647, %v754_v15  ;;  %vm760_vm14 = vweird.f32 %v754_v15 }
 0x4d0   : > { %1290 = vrcp.f32 %v1576_v53 }
 0x4d1   : > { %v767_v29 = vor.u32 1.1754944e-38, %v766_v24  ;;  %vm765_vm3 = vcmp.eq.f32.partialorder %v764_v25, 8.507059e+37 }
 0x4d5   : > { %v1289_v18 = vpop.eup %1288 }
 0x4d6   : > { %v756_v19 = vmul.f32 %v1289_v18, %v754_v15  ;;  %vm761_vm13 = vweird.f32 %v1289_v18  ;;  %v1291_v54 = vpop.eup %1290 }
 0x4d7   : > { %vm762_vm2 = vmor %vm760_vm14, %vm761_vm13  ;;  %v829_v55 = vmul.f32 32.0, %v1291_v54 }
 0x4d8   : > { %v757_v22 = vsub.f32 1.0, %v756_v19 }
 0x4d9   : > { %v830_v56 = vsub.f32 1.0, %v829_v55 }
 0x4da   : > { %v758_v7 = vmul.f32 %v1289_v18, %v757_v22 }
 0x4db   : > { %v831_v57 = vmul.f32 %v1291_v54, %v830_v56 }
 0x4dc   : > { %v759_v28 = vadd.f32 %v1289_v18, %v758_v7 }
 0x4dd   : > { %v832_v58 = vadd.f32 %v1291_v54, %v831_v57 }
 0x4de   : > { %v763_v31 = vsel %vm762_vm2, %v1289_v18, %v759_v28 }
 0x4df   : > { %v768_v32 = vsel %vm765_vm3, %v767_v29, %v763_v31 }
 0x4e0   : > { %v769_v33 = vmul.f32 %v1283_v60, %v768_v32  ;;  %v933_v32 = vld [vmem:[#allocation10 + $0x18] sm:$0xff] }
 0x4e1   : > { %v668_v34 = vpop.permute.xlu0 %667  ;;  %950 = vmatpush.msrb.mxu3 %v933_v32 }
 0x4e2   : > { %688 = vmatpush.msra.mxu2 %v668_v34  ;;  %1153 = vmatmul.msk.f32.vlgmr.msra.gmra.mxu0 %vm414_vm1, %v769_v33 }
 0x4e3   : > { %1149 = vmatmul.msk.f32.vlgmr.msra.gmra.mxu2 %vm414_vm1, %v666_v35  ;;  %v932_v35 = vld [vmem:[#allocation10 + $0x10] sm:$0xff] }
 0x4e4   : > { %815 = vmatpush.msrb.mxu2 %v796_v37  ;;  %951 = vmatpush.msrb.mxu3 %v932_v35  ;;  %v931_v37 = vld [vmem:[#allocation10 + $0x8] sm:$0xff] }
 0x4e6   : > { %952 = vmatpush.msrb.mxu3 %v931_v37 }
 0x4ed   : > { %v565_v36 = vpop.f32.mrf.mxu2 }
 0x4ee   : > { %1145 = vmatmul.msk.f32.vlgmr.msrb.gmra.mxu1 %vm414_vm1, %v565_v36 }
 0x4ef   : > { %878 = vmatpush.msrb.mxu1 %v861_v63 }
 0x4f1   : > { %879 = vmatpush.msrb.mxu1 %v860_v0 }
 0x4f3   : > { %880 = vmatpush.msrb.mxu1 %v859_v1 }
 0x4f5   : > { %881 = vmatpush.msrb.mxu1 %v858_v2  ;;  %v934_v2 = vperm.slane %v1807_v42, 2 }
 0x55f   : > { %v793_v39 = vpop.f32.mrf.mxu0 }
 0x560   : > { %1154 = vmatmul.msk.f32.vlgmr.msrb.gmra.mxu2 %vm414_vm1, %v793_v39  ;;  %v930_v39 = vld [vmem:[#allocation10] sm:$0xff] }
 0x561   : > { %953 = vmatpush.msrb.mxu3 %v930_v39 }
 0x566   : > { %v690_v40 = vpop.f32.mrf.mxu2 }
 0x567   : > { %1150 = vmatmul.msk.f32.vlgmr.msra.gmra.mxu1 %vm414_vm1, %v690_v40  ;;  %vm833_vm1 = vweird.f32 %v1291_v54 }
 0x56b   : > { %v589_v41 = vpop.f32.mrf.mxu1 }
 0x56c   : > { %v613_v43 = vadd.f32 %v1790_v44, %v589_v41  ;;  %v1813_v44 = vsel %vm833_vm1, %v1291_v54, %v832_v58 }
 0x5e3   : > { %v817_v48 = vpop.f32.mrf.mxu2 }
 0x5e4   : > { %v714_v45 = vpop.f32.mrf.mxu1 }
 0x5e5   : > { %v717_v46 = vadd.f32 %v714_v45, %v613_v43 }
 0x5e7   : > { %v820_v49 = vadd.f32 %v817_v48, %v717_v46 }
 0x5e9   : > { %v822_v50 = vadd.f32 %v821_v47, %v820_v49 }
 0x5eb   : > { %v824_v51 = vadd.f32 %v822_v50, %v1756_v4 }
 0x5ed   : > { %v825_v52 = vsel %vm387_vm0, %v824_v51, 0.0 }
 0x5ee   : > { %826 = vadd.xlane.f32.xlu0 %v825_v52 }
 0x661   : > { %v827_v59 = vpop.xlane.xlu0 %826 }
 0x662   : > { %v835_v60 = vmul.f32 %v1813_v44, %v827_v59 }
 0x664   : > { %v836_v61 = vsub.f32 %v824_v51, %v835_v60 }
 0x666   : > { %v837_v62 = vmul.f32 %v836_v61, %v836_v61 }
 0x668   : > { %v838_v4 = vsel %vm387_vm0, %v837_v62, 0.0 }
 0x669   : > { %839 = vadd.xlane.f32.xlu2 %v838_v4 }
 0x6dc   : > { %v840_v3 = vpop.xlane.xlu2 %839 }
 0x6dd   : > { %v841_v5 = vmul.f32 %v840_v3, %v1813_v44 }
 0x6df   : > { %v842_v6 = vadd.f32 1e-05, %v841_v5 }
 0x6e1   : > { %1292 = vrsqrt.f32 %v842_v6  ;;  %vm849_vm5 = vweird.f32 %v842_v6 }
 0x6e7   : > { %v1293_v8 = vpop.eup %1292 }
 0x6e8   : > { %v844_v9 = vmul.f32 %v1293_v8, %v842_v6  ;;  %vm850_vm4 = vweird.f32 %v1293_v8 }
 0x6e9   : > { %vm851_vm6 = vmor %vm849_vm5, %vm850_vm4 }
 0x6ea   : > { %v845_v10 = vmul.f32 %v1293_v8, %v844_v9 }
 0x6ec   : > { %v846_v11 = vmul.f32 0.5, %v845_v10 }
 0x6ee   : > { %v847_v12 = vsub.f32 1.5, %v846_v11 }
 0x6f0   : > { %v848_v13 = vmul.f32 %v1293_v8, %v847_v12 }
 0x6f2   : > { %v852_v15 = vsel %vm851_vm6, %v1293_v8, %v848_v13 }
 0x6f3   : > { %v853_v16 = vmul.f32 %v852_v15, %v836_v61 }
 0x6f5   : > { %v855_v18 = vmul.f32 %v854_v14, %v853_v16 }
 0x6f7   : > { %v857_v19 = vadd.f32 %v856_v17, %v855_v18 }
 0x6f9   : > { %1155 = vmatmul.msk.f32.vlgmr.msrb.gmra.mxu1 %vm387_vm0, %v857_v19 }
 0x776   : > { %v883_v21 = vpop.f32.mrf.mxu1 }
 0x777   : > { %v884_v22 = vadd.f32 %v883_v21, %v862_v20 }
 0x779   : > { %v887_v23 = vmul.f32 0.70710677, %v884_v22  ;;  %v886_v63 = vmul.f32 0.5, %v884_v22 }
 0x77b   : > { %v888_v24 = vmul.f32 %v887_v23, %v887_v23 }
 0x77d   : > { %v889_v7 = vmin.f32 %v888_v24, 16.0 }
 0x77f   : > { %v890_v25 = vmul.f32 2.1237322e-06, %v889_v7  ;;  %v901_v26 = vmul.f32 3.8918573e-05, %v889_v7 }
 0x781   : > { %v891_v27 = vadd.f32 0.00028619796, %v890_v25  ;;  %v902_v28 = vadd.f32 0.001143296, %v901_v26 }
 0x783   : > { %v892_v29 = vmul.f32 %v891_v27, %v889_v7  ;;  %v903_v30 = vmul.f32 %v902_v28, %v889_v7 }
 0x785   : > { %v904_v31 = vadd.f32 0.014752088, %v903_v30  ;;  %v893_v33 = vadd.f32 0.0036580483, %v892_v29 }
 0x787   : > { %v905_v34 = vmul.f32 %v904_v31, %v889_v7  ;;  %v894_v38 = vmul.f32 %v893_v33, %v889_v7 }
 0x789   : > { %v906_v36 = vadd.f32 0.112945676, %v905_v34  ;;  %v895_v43 = vadd.f32 0.05243302, %v894_v38 }
 0x78b   : > { %v907_v40 = vmul.f32 %v906_v36, %v889_v7  ;;  %v896_v47 = vmul.f32 %v895_v43, %v889_v7 }
 0x78d   : > { %v908_v41 = vadd.f32 0.4994258, %v907_v40  ;;  %v897_v48 = vadd.f32 0.18741608, %v896_v47 }
 0x78f   : > { %v909_v45 = vmul.f32 %v908_v41, %v889_v7  ;;  %v898_v50 = vmul.f32 %v897_v48, %v889_v7  ;;  %v983_v7 = vperm.slane %v1807_v42, 6 }
 0x791   : > { %v910_v46 = vadd.f32 1.0, %v909_v45  ;;  %v899_v54 = vadd.f32 1.1283791, %v898_v50 }
 0x793   : > { %1294 = vrcp.f32 %v910_v46  ;;  %v922_v53 = vand.u32 2147483648, %v910_v46  ;;  %v920_v56 = vand.u32 2147483647, %v910_v46  ;;  %vm916_vm8 = vweird.f32 %v910_v46 }
 0x794   : > { %v900_v59 = vmul.f32 %v899_v54, %v887_v23  ;;  %v981_v23 = vperm.slane %v1807_v42, 5 }
 0x795   : > { %v923_v58 = vor.u32 1.1754944e-38, %v922_v53  ;;  %vm921_vm10 = vcmp.eq.f32.partialorder %v920_v56, 8.507059e+37 }
 0x799   : > { %v1295_v49 = vpop.eup %1294 }
 0x79a   : > { %v912_v51 = vmul.f32 %v1295_v49, %v910_v46  ;;  %vm917_vm7 = vweird.f32 %v1295_v49 }
 0x79b   : > { %vm918_vm9 = vmor %vm916_vm8, %vm917_vm7 }
 0x79c   : > { %v913_v52 = vsub.f32 1.0, %v912_v51 }
 0x79e   : > { %v914_v55 = vmul.f32 %v1295_v49, %v913_v52 }
 0x7a0   : > { %v915_v57 = vadd.f32 %v1295_v49, %v914_v55 }
 0x7a2   : > { %v919_v60 = vsel %vm918_vm9, %v1295_v49, %v915_v57 }
 0x7a3   : > { %v924_v61 = vsel %vm921_vm10, %v923_v58, %v919_v60 }
 0x7a4   : > { %v925_v62 = vmul.f32 %v924_v61, %v900_v59 }
 0x7a6   : > { %v1156_v4 = vclamps-f32 %v925_v62, 1.0 }
 0x7a8   : > { %v928_v0 = vadd.f32 1.0, %v1156_v4 }
 0x7aa   : > { %v929_v1 = vmul.f32 %v928_v0, %v886_v63 }
 0x7ac   : > { %1157 = vmatmul.msk.f32.vlgmr.msrb.gmra.mxu3 %vm387_vm0, %v929_v1 }
 0x82f   : > { %v955_v3 = vpop.f32.mrf.mxu3 }
 0x830   : > { %v956_v5 = vadd.f32 %v955_v3, %v934_v2 }
 0x832   : > { %v958_v6 = vadd.f32 %v956_v5, %v857_v19 }
 0x834   : > { %v959_v8 = vsel %vm387_vm0, %v958_v6, 0.0 }
 0x835   : > { %960 = vadd.xlane.f32.xlu1 %v959_v8 }
 0x8a8   : > { %v961_v9 = vpop.xlane.xlu1 %960 }
 0x8a9   : > { %v962_v10 = vmul.f32 %v961_v9, %v1813_v44 }
 0x8ab   : > { %v963_v11 = vsub.f32 %v958_v6, %v962_v10 }
 0x8ad   : > { %v964_v12 = vmul.f32 %v963_v11, %v963_v11 }
 0x8af   : > { %v965_v13 = vsel %vm387_vm0, %v964_v12, 0.0 }
 0x8b0   : > { %966 = vadd.xlane.f32.xlu0 %v965_v13 }
 0x923   : > { %v967_v14 = vpop.xlane.xlu0 %966 }
 0x924   : > { %v968_v15 = vmul.f32 %v967_v14, %v1813_v44 }
 0x926   : > { %v969_v16 = vadd.f32 1e-05, %v968_v15 }
 0x928   : > { %1296 = vrsqrt.f32 %v969_v16  ;;  %vm976_vm12 = vweird.f32 %v969_v16 }
 0x92e   : > { %v1297_v17 = vpop.eup %1296 }
 0x92f   : > { %v971_v18 = vmul.f32 %v1297_v17, %v969_v16  ;;  %vm977_vm11 = vweird.f32 %v1297_v17 }
 0x930   : > { %vm978_vm13 = vmor %vm976_vm12, %vm977_vm11 }
 0x931   : > { %v972_v19 = vmul.f32 %v1297_v17, %v971_v18 }
 0x933   : > { %v973_v20 = vmul.f32 0.5, %v972_v19 }
 0x935   : > { %v974_v21 = vsub.f32 1.5, %v973_v20 }
 0x937   : > { %v975_v22 = vmul.f32 %v1297_v17, %v974_v21 }
 0x939   : > { %v979_v44 = vsel %vm978_vm13, %v1297_v17, %v975_v22 }
 0x93a   : > { %v980_v24 = vmul.f32 %v979_v44, %v963_v11 }
 0x93c   : > { %v982_v25 = vmul.f32 %v981_v23, %v980_v24 }
 0x93e   : > { %v984_v26 = vadd.f32 %v983_v7, %v982_v25 }
 0x940   : > { %985 = vst.msk [vmem:[%s376_s18] sm:$0xff] %vm387_vm0, %v984_v26 }
 0x941   : > { %1505 = shalt.err (!%p1502_p9)
}
 0x942   : > { %1184 = dma.vmem_to_hbm [thread:$0]  (%p1703_p13), %s1000_s23, 128, %s1002_s28, %s987_s8  }
 0x943 PF: > { %s1013_s29 = sand.u32 1, %s1544_s24   ;;  %p1882_p10 = scmp.ge.s32.totalorder %s1556_s27, 2 }
 0x944   : > { %s1014_s9 = scalar_lea.sflag [#allocation4], %s1013_s29 }
 0x945   : > { %p1207_p11 = pnand %p1882_p10, %p1708_p4 }
 0x947   : > { %p1208_p0 = pneg %p1207_p11 }
 0x949   : > { %1539 = dma.done.wait (%p1208_p0), %s1014_s9, 128  }
 0x94a   : > { %1541 = vsyncadd (%p1208_p0), %s1014_s9, 4294967168  ;;  %p23_p2 = scmp.ge.s32.totalorder %s1683_s20, 4   ;;  %s1883_s24 = smov %s1548_s25 }
 0x94b   : > { %s1884_s25 = smov %s1552_s26  ;;  %s1885_s26 = smov %s1695_s21 }
 0x94c   : > { %s1886_s27 = smov %s1683_s20  ;;  %25 = sbr.rel (!%p23_p2) target bundleno = 10 (0xa), region = 113 }
 0x951   :  { %1020 = vsyncpa [#allocation3], 1 }
 0x952   :  { %1022 = vsyncpa [#allocation3 + $0x1], 1 }
 0x953   :  { %1023 = vsyncpa [#allocation6], 1 }
 0x954   :  { %1024 = vsyncpa [#allocation9], 1 }
 0x955   :  { %1025 = vsyncpa [#allocation12], 1 }
 0x956   :  { %1026 = vsyncpa [#allocation4], 1 }
 0x957   :  { %1028 = vsyncpa [#allocation4 + $0x1], 1 }

</bundles_post_ra>
